<compile_context>
chip_gen: v7x
topology: tpu7x:2x2x1
jax: 0.10.0
libtpu: 0.0.40
codegen_flags: <defaults>
</compile_context>

<pallas_src>
import functools

import jax
import jax.numpy as jnp
import numpy as np
from jax.experimental import pallas as pl
from jax.experimental.pallas import tpu as pltpu


def _round_up(x: int, m: int) -> int:
    return ((x + m - 1) // m) * m


def _cdiv(a: int, b: int) -> int:
    return (a + b - 1) // b


def _is_v5e() -> bool:
    try:
        kind = jax.devices()[0].device_kind.lower()
        return ("v5 lite" in kind) or ("v5e" in kind) or ("v5litepod" in kind)
    except Exception:  # pragma: no cover - defensive
        return False


# ----------------------------------------------------------------------------
# Pallas kernel: fused 3x3/s2/p1 conv = 3(+1) accumulated MXU dots + bias(+ReLU)
# ----------------------------------------------------------------------------
def _conv3x3_s2_kernel(p0_ref, p1_ref, ph_ref, w_ref, b_ref, o_ref, *,
                       wo_p: int, apply_relu: bool):
    """One grid step = one image x one row tile x one Cout tile.

    p0_ref : (tm, 3*Cin_p) bf16  parity-0 plane, rows aligned with output rows
    p1_ref : (tm, 3*Cin_p) bf16  parity-1 plane, rows aligned with output rows
    ph_ref : (wo_p, 3*Cin_p) bf16  parity-0 plane halo (one extra plane row)
    w_ref  : (3, 3*Cin_p, tn) bf16  indexed by kh; lanes = [kw0|kw1|kw2] * Cin_p
    b_ref  : (1, tn) f32
    o_ref  : (tm, tn) bf16
    """
    tm = o_ref.shape[0]
    f32 = jnp.float32

    # kh = 0 (same plane rows as output rows) with the bias folded in; kh = 1.
    acc = jnp.dot(p0_ref[...], w_ref[0], preferred_element_type=f32) + b_ref[...]
    acc = acc + jnp.dot(p1_ref[...], w_ref[1], preferred_element_type=f32)

    # kh = 2 reads the parity-0 plane shifted down one plane row (wo_p flat
    # rows): rows [wo_p, tm) live in this block, the last wo_p output rows use
    # the halo block.
    w2 = w_ref[2]
    split = tm - wo_p
    if split > 0:
        top = acc[:split, :] + jnp.dot(p0_ref[wo_p:tm, :], w2,
                                       preferred_element_type=f32)
        if apply_relu:
            top = jnp.maximum(top, 0.0)
        o_ref[:split, :] = top.astype(o_ref.dtype)
    bot = acc[split:, :] + jnp.dot(ph_ref[...], w2, preferred_element_type=f32)
    if apply_relu:
        bot = jnp.maximum(bot, 0.0)
    o_ref[split:, :] = bot.astype(o_ref.dtype)


# ----------------------------------------------------------------------------
# 3x3, stride-2, pad-1 convolution (NHWC), row-tiled, no im2col materialisation
# ----------------------------------------------------------------------------
def conv3x3_s2_p1_nhwc(x, w3, bias, apply_relu: bool):
    """x: (N, H, W, C) float, C <= Cin_p (missing channels treated as zero).
    w3: (3, 3*Cin_p, Cout_p) bf16 with layout [kh][kw*Cin_p + c][cout].
    bias: (1, Cout_p) f32.
    Returns (N, Ho, Wo, Cout_p) bf16; channels >= the true Cout are exactly 0."""
    N, H, W, C = x.shape
    _, K3, Cout_p = w3.shape
    Cin_p = K3 // 3
    if C > Cin_p:
        raise ValueError(f"input has {C} channels but packed weights only cover "
                         f"{Cin_p}; refusing to silently truncate")
    Ho, Wo = (H + 1) // 2, (W + 1) // 2
    Wo_p = _round_up(Wo, 8)                         # sublane-aligned plane rows

    # ---- Cout tile / row tile selection -------------------------------------
    tn = 256 if (Cout_p % 256 == 0 and not _is_v5e()) else 128
    # Row tile: largest multiple of Wo_p under a ~20 MiB block budget, capped
    # at 2048 flat rows (>=512-row tiles already hit ~85% of HBM roofline).
    budget = 20 << 20
    per_row = 2 * 2 * K3 * 2 + 2 * tn * 2 + 12 * tn  # taps(dbuf) + out(dbuf) + f32 tmp
    target = max(Wo_p, min(2048, budget // per_row))
    th = max(1, min(Ho, target // Wo_p))
    n_h = _cdiv(Ho, th)
    th = _cdiv(Ho, n_h)                              # rebalance; never grows th
    Ho_p = th * n_h
    tm = th * Wo_p
    n_cout = Cout_p // tn
    if tn == 256 and N * n_h * n_cout < 2:           # keep both v7x TCs busy
        tn, n_cout = 128, Cout_p // 128

    # ---- tap-plane construction (pure XLA, fused under jit) -----------------
    xb = x.astype(jnp.bfloat16)
    if C < Cin_p:
        xb = jnp.pad(xb, ((0, 0), (0, 0), (0, 0), (0, Cin_p - C)))
    hp, wp = 2 * Ho_p + 2, 2 * Wo_p + 2              # conv pad=1 + alignment slack
    xp = jnp.pad(xb, ((0, 0), (1, hp - H - 1), (1, wp - W - 1), (0, 0)))

    # plane_rp[n, r*Wo_p + c, kw*Cin_p + ch] = xp[n, 2r + rp, 2c + kw, ch]
    # conv tap (kh, kw) of output row ho lives in plane_(kh%2) row ho + kh//2.
    R = (Ho_p + 1) * Wo_p
    planes = []
    for rp in range(2):
        parts = [xp[:, rp::2, kw::2, :][:, :Ho_p + 1, :Wo_p, :] for kw in range(3)]
        planes.append(jnp.concatenate(parts, axis=-1).reshape(N, R, K3))
    p0, p1 = planes

    grid = (N, n_h, n_cout)                          # cout innermost: tap blocks
                                                     # are reused across cout tiles
    cost = pl.CostEstimate(
        flops=2 * N * Ho_p * Wo_p * 3 * K3 * Cout_p,
        transcendentals=0,
        bytes_accessed=int(2 * N * R * K3 * 2 + 3 * K3 * Cout_p * 2
                           + N * Ho_p * Wo_p * Cout_p * 2))

    est_vmem = (2 * 2 * tm * K3 * 2 + 2 * Wo_p * K3 * 2   # taps (+halo), dbuf, bf16
                + 2 * 3 * K3 * tn * 2 + 2 * 2 * tn * 4    # weights + bias, dbuf
                + 2 * tm * tn * 2                          # output block, dbuf, bf16
                + 4 * tm * tn * 4)                         # f32 temporaries (generous)
    vmem_limit = int(min(64 << 20, max(32 << 20, est_vmem * 3 // 2)))

    out = pl.pallas_call(
        functools.partial(_conv3x3_s2_kernel, wo_p=Wo_p, apply_relu=apply_relu),
        out_shape=jax.ShapeDtypeStruct((N, Ho_p * Wo_p, Cout_p), jnp.bfloat16),
        grid=grid,
        in_specs=[
            pl.BlockSpec((None, tm, K3), lambda n, i, j: (n, i, 0)),       # p0
            pl.BlockSpec((None, tm, K3), lambda n, i, j: (n, i, 0)),       # p1
            pl.BlockSpec((None, Wo_p, K3),                                  # p0 halo row
                         lambda n, i, j: (n, (i + 1) * th, 0)),
            pl.BlockSpec((3, K3, tn), lambda n, i, j: (0, 0, j)),           # weights
            pl.BlockSpec((1, tn), lambda n, i, j: (0, j)),                  # bias
        ],
        out_specs=pl.BlockSpec((None, tm, tn), lambda n, i, j: (n, i, j)),
        compiler_params=pltpu.CompilerParams(
            dimension_semantics=("parallel", "parallel", "arbitrary"),
            vmem_limit_bytes=vmem_limit),
        cost_estimate=cost,
    )(p0, p1, p0, w3, bias)

    # Drop alignment rows/cols (they hold bias / ReLU(bias), not zeros); keep
    # the zero-padded channels so the next level consumes the map directly.
    return out.reshape(N, Ho_p, Wo_p, Cout_p)[:, :Ho, :Wo, :]


# ----------------------------------------------------------------------------
# Whole forward pass (jitted so tap construction / slices fuse)
# ----------------------------------------------------------------------------
@functools.partial(jax.jit, static_argnames=("num_levels", "output_ch"))
def _forward(feat_nchw, w3s, biases, *, num_levels: int, output_ch: int):
    feat = jnp.transpose(feat_nchw, (0, 2, 3, 1))          # NCHW -> NHWC
    features = []
    for i in range(num_levels):
        apply_relu = i != num_levels - 1
        feat = conv3x3_s2_p1_nhwc(feat, w3s[i], biases[i], apply_relu)
        features.append(jnp.transpose(feat[..., :output_ch],
                                      (0, 3, 1, 2)).astype(jnp.float32))
    return features


# ----------------------------------------------------------------------------
# The module (parameters + forward), NCHW interface like the PyTorch original
# ----------------------------------------------------------------------------
class ExtraVisionBackboneLevel:
    def __init__(self, input_ch: int, output_ch: int, num_levels: int = 2,
                 *, key=None):
        if key is None:
            key = jax.random.PRNGKey(42)
        self.input_ch = input_ch
        self.output_ch = output_ch
        self.num_levels = num_levels
        self.cout_p = _round_up(output_ch, 128)

        self.weights_oihw = []   # (Cout, Cin, 3, 3) f32, PyTorch convention
        self.biases = []         # (Cout,) f32
        self.w3_bf16 = []        # (3, 3*Cin_p, Cout_p) bf16, precomputed
        self.bias_pad = []       # (1, Cout_p) f32, precomputed
        for i in range(num_levels):
            cin = output_ch if i > 0 else input_ch
            # Deeper levels consume the previous level's channel-padded bf16
            # feature map, so their packed Cin matches Cout_p exactly.
            cin_p = self.cout_p if i > 0 else _round_up(cin, 8)
            key, kw_key, kb_key = jax.random.split(key, 3)
            fan_in = cin * 9
            scale = 1.0 / np.sqrt(fan_in)
            w = jax.random.uniform(kw_key, (output_ch, cin, 3, 3),
                                   jnp.float32, -scale, scale)
            b = jax.random.uniform(kb_key, (output_ch,), jnp.float32, -scale, scale)
            self.weights_oihw.append(w)
            self.biases.append(b)
            # (Cout, Cin, 3, 3) -> (kh, kw, Cin, Cout) -> pad -> (3, 3*Cin_p, Cout_p)
            wt = jnp.transpose(w, (2, 3, 1, 0))
            wt = jnp.pad(wt, ((0, 0), (0, 0), (0, cin_p - cin),
                              (0, self.cout_p - output_ch)))
            self.w3_bf16.append(
                wt.reshape(3, 3 * cin_p, self.cout_p).astype(jnp.bfloat16))
            self.bias_pad.append(
                jnp.pad(b, (0, self.cout_p - output_ch)).reshape(1, -1))

    def __call__(self, feat_nchw):
        """feat: (N, input_ch, H, W) -> list of (N, output_ch, H/2^l, W/2^l)."""
        return _forward(feat_nchw, tuple(self.w3_bf16), tuple(self.bias_pad),
                        num_levels=self.num_levels, output_ch=self.output_ch)


# ----------------------------------------------------------------------------
# Pure-JAX references (f32, and bf16-quantised to match the MXU data path)
# ----------------------------------------------------------------------------
def _reference(module, x_nchw, *, quantize: bool):
    feat = x_nchw
    outs = []
    for i in range(module.num_levels):
        w = module.weights_oihw[i]
        if quantize:
            feat = feat.astype(jnp.bfloat16).astype(jnp.float32)
            w = w.astype(jnp.bfloat16).astype(jnp.float32)
        feat = jax.lax.conv_general_dilated(
            feat, w, window_strides=(2, 2), padding=((1, 1), (1, 1)),
            dimension_numbers=("NCHW", "OIHW", "NCHW"),
            precision=jax.lax.Precision.HIGHEST)
        feat = feat + module.biases[i].reshape(1, -1, 1, 1)
        if i != module.num_levels - 1:
            feat = jnp.maximum(feat, 0.0)
        outs.append(feat)
    return outs


if __name__ == "__main__":
    key = jax.random.PRNGKey(0)
    N, Cin, H, W = 2, 4, 16, 16
    Cout, num_levels = 8, 2

    x = jax.random.normal(key, (N, Cin, H, W), jnp.float32)

    module = ExtraVisionBackboneLevel(Cin, Cout, num_levels)
    feats = module(x)
    feats = [jax.block_until_ready(f) for f in feats]

    refs_q = _reference(module, x, quantize=True)    # matches bf16 MXU inputs
    refs_f = _reference(module, x, quantize=False)   # full-f32 module semantics
    expected_shapes = [(N, Cout, H // 2, W // 2), (N, Cout, H // 4, W // 4)]
    assert len(feats) == num_levels
    for f, rq, rf, s in zip(feats, refs_q, refs_f, expected_shapes):
        assert f.shape == s, (f.shape, s)
        np.testing.assert_allclose(np.asarray(f), np.asarray(rq),
                                   rtol=2e-2, atol=2e-2)
        # Loosened vs the f32 reference because GEMM operands / outputs are bf16.
        np.testing.assert_allclose(np.asarray(f), np.asarray(rf),
                                   rtol=6e-2, atol=6e-2)

    print("KERNEL_OK")
</pallas_src>

<mosaic_0001>
module attributes {stable_mosaic.version = 11 : i64} {
  func.func @_conv3x3_s2_kernel(%arg0: i32, %arg1: i32, %arg2: i32, %arg3: memref<1x64x24xbf16, #tpu.memory_space<vmem>>, %arg4: memref<1x64x24xbf16, #tpu.memory_space<vmem>>, %arg5: memref<1x8x24xbf16, #tpu.memory_space<vmem>>, %arg6: memref<3x24x128xbf16, #tpu.memory_space<vmem>>, %arg7: memref<1x128xf32, #tpu.memory_space<vmem>>, %arg8: memref<1x64x128xbf16, #tpu.memory_space<vmem>>) attributes {dimension_semantics = [#tpu.dimension_semantics<parallel>, #tpu.dimension_semantics<parallel>, #tpu.dimension_semantics<arbitrary>], iteration_bounds = array<i64: 2, 1, 1>, scalar_prefetch = 0 : i64, scratch_operands = 0 : i64, tpu.core_type = #tpu.core_type<tc>, window_params = [{transform_indices = @transform_0, window_bounds = array<i64: 1, 64, 24>}, {transform_indices = @transform_1, window_bounds = array<i64: 1, 64, 24>}, {transform_indices = @transform_2, window_bounds = array<i64: 1, 8, 24>}, {transform_indices = @transform_3, window_bounds = array<i64: 3, 24, 128>}, {transform_indices = @transform_4, window_bounds = array<i64: 1, 128>}, {transform_indices = @transform_5, window_bounds = array<i64: 1, 64, 128>}]} {
    %c0 = arith.constant 0 : index
    %c0_0 = arith.constant 0 : index
    %c0_1 = arith.constant 0 : index
    %0 = vector.load %arg3[%c0, %c0_0, %c0_1] : memref<1x64x24xbf16, #tpu.memory_space<vmem>>, vector<1x64x24xbf16>
    %1 = vector.shape_cast %0 : vector<1x64x24xbf16> to vector<64x24xbf16>
    %c0_2 = arith.constant 0 : index
    %c0_3 = arith.constant 0 : index
    %c0_4 = arith.constant 0 : index
    %2 = vector.load %arg6[%c0_2, %c0_3, %c0_4] : memref<3x24x128xbf16, #tpu.memory_space<vmem>>, vector<1x24x128xbf16>
    %3 = vector.shape_cast %2 : vector<1x24x128xbf16> to vector<24x128xbf16>
    %cst = arith.constant dense<0.000000e+00> : vector<64x128xf32>
    %4 = tpu.matmul %1, %3, %cst {dimension_numbers = #tpu.dot_dimension_numbers<[1], [0], [0], [1], [0, 0, 1, 1], [], []>} : vector<64x24xbf16>, vector<24x128xbf16>, vector<64x128xf32> -> vector<64x128xf32>
    %c0_5 = arith.constant 0 : index
    %c0_6 = arith.constant 0 : index
    %5 = vector.load %arg7[%c0_5, %c0_6] : memref<1x128xf32, #tpu.memory_space<vmem>>, vector<1x128xf32>
    %6 = vector.broadcast %5 : vector<1x128xf32> to vector<64x128xf32>
    %7 = arith.addf %4, %6 : vector<64x128xf32>
    %c0_7 = arith.constant 0 : index
    %c0_8 = arith.constant 0 : index
    %c0_9 = arith.constant 0 : index
    %8 = vector.load %arg4[%c0_7, %c0_8, %c0_9] : memref<1x64x24xbf16, #tpu.memory_space<vmem>>, vector<1x64x24xbf16>
    %9 = vector.shape_cast %8 : vector<1x64x24xbf16> to vector<64x24xbf16>
    %c1 = arith.constant 1 : index
    %c0_10 = arith.constant 0 : index
    %c0_11 = arith.constant 0 : index
    %10 = vector.load %arg6[%c1, %c0_10, %c0_11] : memref<3x24x128xbf16, #tpu.memory_space<vmem>>, vector<1x24x128xbf16>
    %11 = vector.shape_cast %10 : vector<1x24x128xbf16> to vector<24x128xbf16>
    %cst_12 = arith.constant dense<0.000000e+00> : vector<64x128xf32>
    %12 = tpu.matmul %9, %11, %cst_12 {dimension_numbers = #tpu.dot_dimension_numbers<[1], [0], [0], [1], [0, 0, 1, 1], [], []>} : vector<64x24xbf16>, vector<24x128xbf16>, vector<64x128xf32> -> vector<64x128xf32>
    %13 = arith.addf %7, %12 : vector<64x128xf32>
    %c2 = arith.constant 2 : index
    %c0_13 = arith.constant 0 : index
    %c0_14 = arith.constant 0 : index
    %14 = vector.load %arg6[%c2, %c0_13, %c0_14] : memref<3x24x128xbf16, #tpu.memory_space<vmem>>, vector<1x24x128xbf16>
    %15 = vector.shape_cast %14 : vector<1x24x128xbf16> to vector<24x128xbf16>
    %16 = vector.extract_strided_slice %13 {offsets = [0, 0], sizes = [56, 128], strides = [1, 1]} : vector<64x128xf32> to vector<56x128xf32>
    %c0_15 = arith.constant 0 : index
    %c8 = arith.constant 8 : index
    %c0_16 = arith.constant 0 : index
    %17 = vector.load %arg3[%c0_15, %c8, %c0_16] : memref<1x64x24xbf16, #tpu.memory_space<vmem>>, vector<1x56x24xbf16>
    %18 = vector.shape_cast %17 : vector<1x56x24xbf16> to vector<56x24xbf16>
    %cst_17 = arith.constant dense<0.000000e+00> : vector<56x128xf32>
    %19 = tpu.matmul %18, %15, %cst_17 {dimension_numbers = #tpu.dot_dimension_numbers<[1], [0], [0], [1], [0, 0, 1, 1], [], []>} : vector<56x24xbf16>, vector<24x128xbf16>, vector<56x128xf32> -> vector<56x128xf32>
    %20 = arith.addf %16, %19 : vector<56x128xf32>
    %cst_18 = arith.constant 0.000000e+00 : f32
    %21 = vector.broadcast %cst_18 : f32 to vector<56x128xf32>
    %22 = arith.maximumf %20, %21 : vector<56x128xf32>
    %23 = arith.truncf %22 : vector<56x128xf32> to vector<56x128xbf16>
    %c0_19 = arith.constant 0 : index
    %c0_20 = arith.constant 0 : index
    %c0_21 = arith.constant 0 : index
    %24 = vector.load %arg8[%c0_19, %c0_20, %c0_21] : memref<1x64x128xbf16, #tpu.memory_space<vmem>>, vector<1x56x128xbf16>
    %25 = vector.shape_cast %24 : vector<1x56x128xbf16> to vector<56x128xbf16>
    %26 = vector.shape_cast %23 : vector<56x128xbf16> to vector<1x56x128xbf16>
    tpu.vector_store %arg8[%c0_19, %c0_20, %c0_21], %26 {strides = array<i32>} : memref<1x64x128xbf16, #tpu.memory_space<vmem>>, vector<1x56x128xbf16>,
    %27 = vector.extract_strided_slice %13 {offsets = [56, 0], sizes = [8, 128], strides = [1, 1]} : vector<64x128xf32> to vector<8x128xf32>
    %c0_22 = arith.constant 0 : index
    %c0_23 = arith.constant 0 : index
    %c0_24 = arith.constant 0 : index
    %28 = vector.load %arg5[%c0_22, %c0_23, %c0_24] : memref<1x8x24xbf16, #tpu.memory_space<vmem>>, vector<1x8x24xbf16>
    %29 = vector.shape_cast %28 : vector<1x8x24xbf16> to vector<8x24xbf16>
    %cst_25 = arith.constant dense<0.000000e+00> : vector<8x128xf32>
    %30 = tpu.matmul %29, %15, %cst_25 {dimension_numbers = #tpu.dot_dimension_numbers<[1], [0], [0], [1], [0, 0, 1, 1], [], []>} : vector<8x24xbf16>, vector<24x128xbf16>, vector<8x128xf32> -> vector<8x128xf32>
    %31 = arith.addf %27, %30 : vector<8x128xf32>
    %cst_26 = arith.constant 0.000000e+00 : f32
    %32 = vector.broadcast %cst_26 : f32 to vector<8x128xf32>
    %33 = arith.maximumf %31, %32 : vector<8x128xf32>
    %34 = arith.truncf %33 : vector<8x128xf32> to vector<8x128xbf16>
    %c0_27 = arith.constant 0 : index
    %c56 = arith.constant 56 : index
    %c0_28 = arith.constant 0 : index
    %35 = vector.load %arg8[%c0_27, %c56, %c0_28] : memref<1x64x128xbf16, #tpu.memory_space<vmem>>, vector<1x8x128xbf16>
    %36 = vector.shape_cast %35 : vector<1x8x128xbf16> to vector<8x128xbf16>
    %37 = vector.shape_cast %34 : vector<8x128xbf16> to vector<1x8x128xbf16>
    tpu.vector_store %arg8[%c0_27, %c56, %c0_28], %37 {strides = array<i32>} : memref<1x64x128xbf16, #tpu.memory_space<vmem>>, vector<1x8x128xbf16>,
    return
  }
  func.func @transform_0(%arg0: i32, %arg1: i32, %arg2: i32) -> (i32, i32, i32) {
    %c0_i32 = arith.constant 0 : i32
    %c0_i32_0 = arith.constant 0 : i32
    return %arg0, %arg1, %c0_i32 : i32, i32, i32
  }
  func.func @transform_1(%arg0: i32, %arg1: i32, %arg2: i32) -> (i32, i32, i32) {
    %c0_i32 = arith.constant 0 : i32
    %c0_i32_0 = arith.constant 0 : i32
    return %arg0, %arg1, %c0_i32 : i32, i32, i32
  }
  func.func @transform_2(%arg0: i32, %arg1: i32, %arg2: i32) -> (i32, i32, i32) {
    %c1_i32 = arith.constant 1 : i32
    %0 = arith.addi %arg1, %c1_i32 : i32
    %c8_i32 = arith.constant 8 : i32
    %1 = arith.muli %0, %c8_i32 : i32
    %c0_i32 = arith.constant 0 : i32
    %c0_i32_0 = arith.constant 0 : i32
    return %arg0, %1, %c0_i32 : i32, i32, i32
  }
  func.func @transform_3(%arg0: i32, %arg1: i32, %arg2: i32) -> (i32, i32, i32) {
    %c0_i32 = arith.constant 0 : i32
    %c0_i32_0 = arith.constant 0 : i32
    %c0_i32_1 = arith.constant 0 : i32
    return %c0_i32, %c0_i32_0, %arg2 : i32, i32, i32
  }
  func.func @transform_4(%arg0: i32, %arg1: i32, %arg2: i32) -> (i32, i32) {
    %c0_i32 = arith.constant 0 : i32
    %c0_i32_0 = arith.constant 0 : i32
    return %c0_i32, %arg2 : i32, i32
  }
  func.func @transform_5(%arg0: i32, %arg1: i32, %arg2: i32) -> (i32, i32, i32) {
    %c0_i32 = arith.constant 0 : i32
    return %arg0, %arg1, %arg2 : i32, i32, i32
  }
}

module attributes {stable_mosaic.version = 11 : i64} {
  func.func @_conv3x3_s2_kernel(%arg0: i32, %arg1: i32, %arg2: i32, %arg3: memref<1x32x384xbf16, #tpu.memory_space<vmem>>, %arg4: memref<1x32x384xbf16, #tpu.memory_space<vmem>>, %arg5: memref<1x8x384xbf16, #tpu.memory_space<vmem>>, %arg6: memref<3x384x128xbf16, #tpu.memory_space<vmem>>, %arg7: memref<1x128xf32, #tpu.memory_space<vmem>>, %arg8: memref<1x32x128xbf16, #tpu.memory_space<vmem>>) attributes {dimension_semantics = [#tpu.dimension_semantics<parallel>, #tpu.dimension_semantics<parallel>, #tpu.dimension_semantics<arbitrary>], iteration_bounds = array<i64: 2, 1, 1>, scalar_prefetch = 0 : i64, scratch_operands = 0 : i64, tpu.core_type = #tpu.core_type<tc>, window_params = [{transform_indices = @transform_0, window_bounds = array<i64: 1, 32, 384>}, {transform_indices = @transform_1, window_bounds = array<i64: 1, 32, 384>}, {transform_indices = @transform_2, window_bounds = array<i64: 1, 8, 384>}, {transform_indices = @transform_3, window_bounds = array<i64: 3, 384, 128>}, {transform_indices = @transform_4, window_bounds = array<i64: 1, 128>}, {transform_indices = @transform_5, window_bounds = array<i64: 1, 32, 128>}]} {
    %c0 = arith.constant 0 : index
    %c0_0 = arith.constant 0 : index
    %c0_1 = arith.constant 0 : index
    %0 = vector.load %arg3[%c0, %c0_0, %c0_1] : memref<1x32x384xbf16, #tpu.memory_space<vmem>>, vector<1x32x384xbf16>
    %1 = vector.shape_cast %0 : vector<1x32x384xbf16> to vector<32x384xbf16>
    %c0_2 = arith.constant 0 : index
    %c0_3 = arith.constant 0 : index
    %c0_4 = arith.constant 0 : index
    %2 = vector.load %arg6[%c0_2, %c0_3, %c0_4] : memref<3x384x128xbf16, #tpu.memory_space<vmem>>, vector<1x384x128xbf16>
    %3 = vector.shape_cast %2 : vector<1x384x128xbf16> to vector<384x128xbf16>
    %cst = arith.constant dense<0.000000e+00> : vector<32x128xf32>
    %4 = tpu.matmul %1, %3, %cst {dimension_numbers = #tpu.dot_dimension_numbers<[1], [0], [0], [1], [0, 0, 1, 1], [], []>} : vector<32x384xbf16>, vector<384x128xbf16>, vector<32x128xf32> -> vector<32x128xf32>
    %c0_5 = arith.constant 0 : index
    %c0_6 = arith.constant 0 : index
    %5 = vector.load %arg7[%c0_5, %c0_6] : memref<1x128xf32, #tpu.memory_space<vmem>>, vector<1x128xf32>
    %6 = vector.broadcast %5 : vector<1x128xf32> to vector<32x128xf32>
    %7 = arith.addf %4, %6 : vector<32x128xf32>
    %c0_7 = arith.constant 0 : index
    %c0_8 = arith.constant 0 : index
    %c0_9 = arith.constant 0 : index
    %8 = vector.load %arg4[%c0_7, %c0_8, %c0_9] : memref<1x32x384xbf16, #tpu.memory_space<vmem>>, vector<1x32x384xbf16>
    %9 = vector.shape_cast %8 : vector<1x32x384xbf16> to vector<32x384xbf16>
    %c1 = arith.constant 1 : index
    %c0_10 = arith.constant 0 : index
    %c0_11 = arith.constant 0 : index
    %10 = vector.load %arg6[%c1, %c0_10, %c0_11] : memref<3x384x128xbf16, #tpu.memory_space<vmem>>, vector<1x384x128xbf16>
    %11 = vector.shape_cast %10 : vector<1x384x128xbf16> to vector<384x128xbf16>
    %cst_12 = arith.constant dense<0.000000e+00> : vector<32x128xf32>
    %12 = tpu.matmul %9, %11, %cst_12 {dimension_numbers = #tpu.dot_dimension_numbers<[1], [0], [0], [1], [0, 0, 1, 1], [], []>} : vector<32x384xbf16>, vector<384x128xbf16>, vector<32x128xf32> -> vector<32x128xf32>
    %13 = arith.addf %7, %12 : vector<32x128xf32>
    %c2 = arith.constant 2 : index
    %c0_13 = arith.constant 0 : index
    %c0_14 = arith.constant 0 : index
    %14 = vector.load %arg6[%c2, %c0_13, %c0_14] : memref<3x384x128xbf16, #tpu.memory_space<vmem>>, vector<1x384x128xbf16>
    %15 = vector.shape_cast %14 : vector<1x384x128xbf16> to vector<384x128xbf16>
    %16 = vector.extract_strided_slice %13 {offsets = [0, 0], sizes = [24, 128], strides = [1, 1]} : vector<32x128xf32> to vector<24x128xf32>
    %c0_15 = arith.constant 0 : index
    %c8 = arith.constant 8 : index
    %c0_16 = arith.constant 0 : index
    %17 = vector.load %arg3[%c0_15, %c8, %c0_16] : memref<1x32x384xbf16, #tpu.memory_space<vmem>>, vector<1x24x384xbf16>
    %18 = vector.shape_cast %17 : vector<1x24x384xbf16> to vector<24x384xbf16>
    %cst_17 = arith.constant dense<0.000000e+00> : vector<24x128xf32>
    %19 = tpu.matmul %18, %15, %cst_17 {dimension_numbers = #tpu.dot_dimension_numbers<[1], [0], [0], [1], [0, 0, 1, 1], [], []>} : vector<24x384xbf16>, vector<384x128xbf16>, vector<24x128xf32> -> vector<24x128xf32>
    %20 = arith.addf %16, %19 : vector<24x128xf32>
    %21 = arith.truncf %20 : vector<24x128xf32> to vector<24x128xbf16>
    %c0_18 = arith.constant 0 : index
    %c0_19 = arith.constant 0 : index
    %c0_20 = arith.constant 0 : index
    %22 = vector.load %arg8[%c0_18, %c0_19, %c0_20] : memref<1x32x128xbf16, #tpu.memory_space<vmem>>, vector<1x24x128xbf16>
    %23 = vector.shape_cast %22 : vector<1x24x128xbf16> to vector<24x128xbf16>
    %24 = vector.shape_cast %21 : vector<24x128xbf16> to vector<1x24x128xbf16>
    tpu.vector_store %arg8[%c0_18, %c0_19, %c0_20], %24 {strides = array<i32>} : memref<1x32x128xbf16, #tpu.memory_space<vmem>>, vector<1x24x128xbf16>,
    %25 = vector.extract_strided_slice %13 {offsets = [24, 0], sizes = [8, 128], strides = [1, 1]} : vector<32x128xf32> to vector<8x128xf32>
    %c0_21 = arith.constant 0 : index
    %c0_22 = arith.constant 0 : index
    %c0_23 = arith.constant 0 : index
    %26 = vector.load %arg5[%c0_21, %c0_22, %c0_23] : memref<1x8x384xbf16, #tpu.memory_space<vmem>>, vector<1x8x384xbf16>
    %27 = vector.shape_cast %26 : vector<1x8x384xbf16> to vector<8x384xbf16>
    %cst_24 = arith.constant dense<0.000000e+00> : vector<8x128xf32>
    %28 = tpu.matmul %27, %15, %cst_24 {dimension_numbers = #tpu.dot_dimension_numbers<[1], [0], [0], [1], [0, 0, 1, 1], [], []>} : vector<8x384xbf16>, vector<384x128xbf16>, vector<8x128xf32> -> vector<8x128xf32>
    %29 = arith.addf %25, %28 : vector<8x128xf32>
    %30 = arith.truncf %29 : vector<8x128xf32> to vector<8x128xbf16>
    %c0_25 = arith.constant 0 : index
    %c24 = arith.constant 24 : index
    %c0_26 = arith.constant 0 : index
    %31 = vector.load %arg8[%c0_25, %c24, %c0_26] : memref<1x32x128xbf16, #tpu.memory_space<vmem>>, vector<1x8x128xbf16>
    %32 = vector.shape_cast %31 : vector<1x8x128xbf16> to vector<8x128xbf16>
    %33 = vector.shape_cast %30 : vector<8x128xbf16> to vector<1x8x128xbf16>
    tpu.vector_store %arg8[%c0_25, %c24, %c0_26], %33 {strides = array<i32>} : memref<1x32x128xbf16, #tpu.memory_space<vmem>>, vector<1x8x128xbf16>,
    return
  }
  func.func @transform_0(%arg0: i32, %arg1: i32, %arg2: i32) -> (i32, i32, i32) {
    %c0_i32 = arith.constant 0 : i32
    %c0_i32_0 = arith.constant 0 : i32
    return %arg0, %arg1, %c0_i32 : i32, i32, i32
  }
  func.func @transform_1(%arg0: i32, %arg1: i32, %arg2: i32) -> (i32, i32, i32) {
    %c0_i32 = arith.constant 0 : i32
    %c0_i32_0 = arith.constant 0 : i32
    return %arg0, %arg1, %c0_i32 : i32, i32, i32
  }
  func.func @transform_2(%arg0: i32, %arg1: i32, %arg2: i32) -> (i32, i32, i32) {
    %c1_i32 = arith.constant 1 : i32
    %0 = arith.addi %arg1, %c1_i32 : i32
    %c4_i32 = arith.constant 4 : i32
    %1 = arith.muli %0, %c4_i32 : i32
    %c0_i32 = arith.constant 0 : i32
    %c0_i32_0 = arith.constant 0 : i32
    return %arg0, %1, %c0_i32 : i32, i32, i32
  }
  func.func @transform_3(%arg0: i32, %arg1: i32, %arg2: i32) -> (i32, i32, i32) {
    %c0_i32 = arith.constant 0 : i32
    %c0_i32_0 = arith.constant 0 : i32
    %c0_i32_1 = arith.constant 0 : i32
    return %c0_i32, %c0_i32_0, %arg2 : i32, i32, i32
  }
  func.func @transform_4(%arg0: i32, %arg1: i32, %arg2: i32) -> (i32, i32) {
    %c0_i32 = arith.constant 0 : i32
    %c0_i32_0 = arith.constant 0 : i32
    return %c0_i32, %arg2 : i32, i32
  }
  func.func @transform_5(%arg0: i32, %arg1: i32, %arg2: i32) -> (i32, i32, i32) {
    %c0_i32 = arith.constant 0 : i32
    return %arg0, %arg1, %arg2 : i32, i32, i32
  }
}

</mosaic_0001>

<bundles_post_ra>
// kernel: _forward.2
= control target key start
LH: loop header
LB: loop body
LE: loop exit
PB: predicated region body
PF: predicated region fallthrough
CT: control target
= control target key end

     0   :  { %s1324_s18 = smov 0   ;;  %s1326_s19 = smov 0   ;;  %s1418_s0 = inlined_call_operand.vmem [shape: bf16[2,72,24], index: 0, kind: input, shape index: {}, may-alias: {0,2}]   ;;  %s1419_s1 = inlined_call_operand.vmem [shape: bf16[2,72,24], index: 1, kind: input, shape index: {}]   ;;  %s1420_s2 = inlined_call_operand.vmem [shape: bf16[2,72,24], index: 2, kind: input, shape index: {}, may-alias: {0,2}]   ;;  %s1421_s3 = inlined_call_operand.vmem [shape: bf16[3,24,128], index: 3, kind: input, shape index: {}]   ;;  %s1422_s4 = inlined_call_operand.vmem [shape: f32[1,128], index: 4, kind: input, shape index: {}]   ;;  %s1423_s5 = inlined_call_operand.vmem [shape: bf16[2,64,128], index: 5, kind: output, shape index: {}]  }
   0x1   :  { %s1328_s20 = smov 0  }
   0x2 LB: > { %s34_s21 = sadd.s32 1, %s1286_s19  ;;  %p1053_p0 = scmp.ge.s32.totalorder %s1290_s20, 1  ;;  %s1290_s20 = sphi %s1328_s20, %s15_s20   ;;  %s1286_s19 = sphi %s1326_s19, %s1425_s19   ;;  %s1282_s18 = sphi %s1324_s18, %s1424_s18  }
   0x3   : > { %p36_p1 = scmp.ge.s32.totalorder %s34_s21, 2  ;;  %p290_p2 = scmp.lt.s32.totalorder %s1290_s20, 3 }
   0x5   : > { %s1427_s21 = smov (%p36_p1, %s34_s21), 0  ;;  %p291_p3 = pnand %p1053_p0, %p290_p2 }
   0x6   : > { %v1250_v0 = vld [vmem:[%s1421_s3] sm:$0xff] (!%p291_p3)   ;;  %vm492_vm0 = vcmask (!%p291_p3), 1043456   ;;  %v1251_v1 = vld [vmem:[%s1421_s3 + $0xc] sm:$0xff] (!%p291_p3)   ;;  %p368_p4 = scmp.lt.s32.totalorder (!%p291_p3), %s1282_s18, 1  ;;  %v1252_v2 = vld [vmem:[%s1421_s3 + $0x8] ss:$0 sps:$4 sm:$0xff] (!%p291_p3)  }
   0x7   : > { %294 = sbr.rel (%p291_p3) target bundleno = 267 (0x10b), region = 40  ;;  %1154 = vmatprep.subr.bf16.mxu1 (!%p291_p3), %v1250_v0  ;;  %1166 = vmatprep.subr.bf16.mxu0 (!%p291_p3), %v1251_v1  ;;  %v1253_v3 = vld [vmem:[%s1421_s3 + $0x14] ss:$0 sps:$4 sm:$0xff] (!%p291_p3)   ;;  %v494_v4 = vsel (!%p291_p3), %vm492_vm0, %v1252_v2, 0  ;;  %v1260_v6 = vld [vmem:[%s1421_s3 + $0x18] sm:$0xff] (!%p291_p3)   ;;  %vm479_vm1 = vcmask (!%p291_p3), 195584  }
   0x8   : > { %1155 = vmatpush3.bf16.msra.mxu1 (!%p291_p3), %v1250_v0  ;;  %1167 = vmatpush3.bf16.msra.mxu0 (!%p291_p3), %v1251_v1  ;;  %v615_v5 = vsel (!%p291_p3), %vm492_vm0, %v1253_v3, 0  ;;  %v1265_v10 = vld [vmem:[%s1421_s3 + $0x20] ss:$0 sps:$4 sm:$0xff] (!%p291_p3)   ;;  %v1292_v11 = vmov (!%p291_p3), 0.0   ;;  %vm1293_vm2 = vmmov (!%p291_p3), 0  }
   0x9   : > { %1218 = vmatprep.subr.msk.bf16.mxu1 (!%p291_p3), %vm492_vm0, %v1252_v2  ;;  %1219 = vmatprep.subr.msk.bf16.mxu0 (!%p291_p3), %vm492_vm0, %v1253_v3  ;;  %v720_v23 = vsel (!%p291_p3), %vm492_vm0, %v1265_v10, 0  ;;  %v1059_v35 = vld [vmem:[%s1422_s4] ss:$0 sm:$0xff] (!%p291_p3) }
   0xc   : > { %1157 = vmatpush3.bf16.msra.mxu1 (!%p291_p3), %v494_v4  ;;  %1169 = vmatpush3.bf16.msra.mxu0 (!%p291_p3), %v615_v5 }
   0xd   : > { %1190 = vmatprep.subr.bf16.mxu1 (!%p291_p3), %v1292_v11  ;;  %1178 = vmatprep.subr.bf16.mxu0 (!%p291_p3), %v1260_v6 }
   0xe   : > { %s1429_s18 = smov (!%p368_p4, %s1282_s18), 1 }
   0xf   : > { %s1361_s30 = smul.u32 36, %s1429_s18  ;;  %s1108_s26 = sshll.u32 %s1429_s18, 5 }
  0x10   : > { %s429_s29 = scalar_lea.vmem %s1423_s5, %s1108_s26 }
  0x11   : > { %s375_s10 = scalar_lea.vmem %s1418_s0, %s1361_s30  ;;  %s1374_s13 = scalar_lea.vmem %s1419_s1, %s1361_s30 }
  0x12   : > { %v432_v7 = vld [vmem:[%s375_s10] sm:$0xf]  ;;  %v433_v8 = vld [vmem:[%s375_s10 + $0x4] sm:$0xf]  ;;  %v434_v9 = vld [vmem:[%s375_s10 + $0x8] sm:$0xf] }
  0x13   : > { %v435_v12 = vld [vmem:[%s375_s10 + $0xc] sm:$0xf]  ;;  %v436_v13 = vld [vmem:[%s375_s10 + $0x10] sm:$0xf]  ;;  %v1060_v14 = vcombine.low %v432_v7, %v433_v8  ;;  %v1258_v16 = vld [vmem:[%s1374_s13] sm:$0xff]   ;;  %v1086_v26 = vcombine.low %v433_v8, %v434_v9  ;;  %s1107_s16 = sadd.s32 32, %s1361_s30 }
  0x14   : > { %v1061_v15 = vcombine.low %v434_v9, %v435_v12  ;;  %v1259_v17 = vld [vmem:[%s1374_s13 + $0x8] sm:$0xff]   ;;  %v437_v18 = vld [vmem:[%s375_s10 + $0x14] sm:$0xf]  ;;  %1170 = vmatprep.mubr.msk.bf16.mxu0 %vm479_vm1, %v1258_v16  ;;  %v438_v21 = vld [vmem:[%s375_s10 + $0x18] sm:$0xf]  ;;  %s408_s23 = scalar_lea.vmem %s1420_s2, %s1107_s16  ;;  %v1087_v27 = vcombine.low %v435_v12, %v436_v13 }
  0x15   : > { %1158 = vmatprep.mubr.msk.bf16.mxu1 %vm479_vm1, %v1060_v14  ;;  %v1062_v19 = vcombine.low %v436_v13, %v437_v18  ;;  %v1262_v20 = vld [vmem:[%s1374_s13 + $0x10] sm:$0xff]   ;;  %1171 = vmatmul.mubr.msk.bf16.vlgmr.msra.gmra.mrb[0].mxu0 %vm479_vm1, %v1259_v17  ;;  %v439_v22 = vld [vmem:[%s375_s10 + $0x1c] sm:$0xf]  ;;  %v836_v28 = vld [vmem:[%s408_s23] sm:$0xf]  ;;  %v1088_v29 = vcombine.low %v437_v18, %v438_v21 }
  0x16   : > { %1159 = vmatmul.mubr.msk.bf16.vlgmr.msra.gmra.mrb[0].mxu1 %vm479_vm1, %v1061_v15  ;;  %1179 = vmatpush3.bf16.msra.mxu0 %v1260_v6  ;;  %v1063_v24 = vcombine.low %v438_v21, %v439_v22  ;;  %v1264_v25 = vld [vmem:[%s1374_s13 + $0x18] sm:$0xff]   ;;  %v1089_v30 = vcombine.low %v439_v22, %v439_v22 }
  0x17   : > { %1191 = vmatpush3.bf16.msra.mxu1 %v1260_v6  ;;  %1162 = vmatprep.mubr.msk.bf16.mxu1 %vm479_vm1, %v1062_v19 }
  0x18   : > { %1174 = vmatprep.mubr.msk.bf16.mxu0 %vm479_vm1, %v1262_v20  ;;  %1220 = vmatprep.subr.msk.bf16.mxu0 %vm492_vm0, %v1265_v10 }
  0x19   : > { %1192 = vmatprep.subr.bf16.mxu1 %v1292_v11 }
  0x1a   : > { %1181 = vmatpush3.bf16.msra.mxu0 %v720_v23 }
  0x1b   : > { %1193 = vmatpush3.bf16.msra.mxu1 %v720_v23 }
  0x1d   : > { %1175 = vmatmul.mubr.msk.bf16.gmra.mrb[4].mxu0 %vm479_vm1, %v1264_v25 }
  0x1e   : > { %1163 = vmatmul.mubr.msk.bf16.gmra.mrb[4].mxu1 %vm479_vm1, %v1063_v24  ;;  %1182 = vmatprep.mubr.msk.bf16.mxu0 %vm479_vm1, %v1086_v26 }
  0x1f   : > { %1194 = vmatprep.mubr.msk.bf16.mxu1 %vm1293_vm2, %v1292_v11 }
  0x25   : > { %1183 = vmatmul.mubr.msk.bf16.vlgmr.msra.gmra.mrb[0].mxu0 %vm479_vm1, %v1087_v27 }
  0x26   : > { %1195 = vmatmul.mubr.msk.bf16.vlgmr.msra.gmra.mrb[8].mxu1 %vm479_vm1, %v836_v28  ;;  %1186 = vmatprep.mubr.msk.bf16.mxu0 %vm479_vm1, %v1088_v29 }
  0x2d   : > { %1187 = vmatmul.mubr.msk.bf16.gmra.mrb[8].mxu0 %vm479_vm1, %v1089_v30 }
  0xe9   : > { %v1160_v31 = vpop.f32.mrb[0].mxu1 }
  0xea   : > { %v530_v32 = vpop.f32.mrb[1].mxu1  ;;  %v539_v52 = vadd.f32 %v1160_v31, %v1059_v35 }
  0xeb   : > { %v1161_v33 = vpop.f32.mrb[2].mxu1  ;;  %v531_v54 = vadd.f32 %v1059_v35, %v530_v32 }
  0xec   : > { %v533_v34 = vpop.f32.mrb[3].mxu1  ;;  %v542_v58 = vadd.f32 %v1161_v33, %v1059_v35 }
  0xed   : > { %v534_v62 = vadd.f32 %v1059_v35, %v533_v34 }
  0xf0   : > { %v1176_v38 = vpop.f32.mrb[4].mxu0 }
  0xf1   : > { %v1164_v36 = vpop.f32.mrb[4].mxu1  ;;  %v667_v41 = vpop.f32.mrb[5].mxu0 }
  0xf2   : > { %v555_v37 = vadd.f32 %v1164_v36, %v1059_v35  ;;  %v546_v39 = vpop.f32.mrb[5].mxu1  ;;  %v1177_v45 = vpop.f32.mrb[6].mxu0 }
  0xf3   : > { %v547_v40 = vadd.f32 %v1059_v35, %v546_v39  ;;  %v1165_v42 = vpop.f32.mrb[6].mxu1  ;;  %v670_v49 = vpop.f32.mrb[7].mxu0 }
  0xf4   : > { %v688_v43 = vadd.f32 %v1176_v38, %v555_v37  ;;  %v558_v44 = vadd.f32 %v1165_v42, %v1059_v35  ;;  %v549_v46 = vpop.f32.mrb[7].mxu1 }
  0xf5   : > { %v686_v47 = vadd.f32 %v667_v41, %v547_v40  ;;  %v550_v48 = vadd.f32 %v1059_v35, %v549_v46 }
  0xf6   : > { %v689_v50 = vadd.f32 %v1177_v45, %v558_v44 }
  0xf7   : > { %v687_v51 = vadd.f32 %v670_v49, %v550_v48 }
  0xf8   : > { %v1184_v55 = vpop.f32.mrb[0].mxu0 }
  0xf9   : > { %v874_v53 = vpop.f32.mrb[8].mxu1  ;;  %v1199_v59 = vadd.f32 %v1184_v55, %v539_v52  ;;  %v756_v60 = vpop.f32.mrb[1].mxu0 }
  0xfa   : > { %v880_v56 = vadd.f32 %v874_v53, %v689_v50  ;;  %v1196_v57 = vpop.f32.mrb[9].mxu1  ;;  %v1201_v0 = vadd.f32 %v756_v60, %v531_v54  ;;  %v1185_v1 = vpop.f32.mrb[2].mxu0 }
  0xfb   : > { %v877_v61 = vpop.f32.mrb[10].mxu1  ;;  %v1203_v3 = vadd.f32 %v1185_v1, %v542_v58  ;;  %v759_v4 = vpop.f32.mrb[3].mxu0  ;;  %v795_v7 = vmax.f32 %v1199_v59, 0.0 }
  0xfc   : > { %v881_v63 = vmax.f32 %v880_v56, 0.0  ;;  %v1197_v2 = vpop.f32.mrb[11].mxu1  ;;  %v1205_v6 = vadd.f32 %v759_v4, %v534_v62  ;;  %v793_v9 = vmax.f32 %v1201_v0, 0.0 }
  0xfd   : > { %v796_v8 = vmax.f32 %v1203_v3, 0.0 }
  0xfe   : > { %v882_v5 = vpack.c.bf16 %v881_v63, %v881_v63  ;;  %v794_v10 = vmax.f32 %v1205_v6, 0.0 }
  0xff   : > { %v1124_v11 = vpack.c.bf16 %v796_v8, %v795_v7 }
 0x100   : > { %883 = vst [vmem:[%s429_s29 + $0x1c] sm:$0xf] %v882_v5  ;;  %v1119_v12 = vpack.c.bf16 %v794_v10, %v793_v9  ;;  %v1188_v13 = vpop.f32.mrb[8].mxu0 }
 0x101   : > { %1131 = vst [vmem:[%s429_s29 + $0x8] sm:$0xff] %v1124_v11   ;;  %v792_v14 = vadd.f32 %v1188_v13, %v688_v43  ;;  %v772_v15 = vpop.f32.mrb[9].mxu0 }
 0x102   : > { %1120 = vst [vmem:[%s429_s29] sm:$0xff] %v1119_v12   ;;  %v790_v16 = vadd.f32 %v772_v15, %v686_v47  ;;  %v1189_v17 = vpop.f32.mrb[10].mxu0 }
 0x103   : > { %v799_v18 = vmax.f32 %v792_v14, 0.0  ;;  %v775_v19 = vpop.f32.mrb[11].mxu0 }
 0x104   : > { %v791_v20 = vadd.f32 %v775_v19, %v687_v51  ;;  %v797_v22 = vmax.f32 %v790_v16, 0.0 }
 0x105   : > { %v1115_v21 = vpack.c.bf16 %v799_v18, %v799_v18 }
 0x106   : > { %v798_v23 = vmax.f32 %v791_v20, 0.0 }
 0x107   : > { %835 = vst [vmem:[%s429_s29 + $0x18] sm:$0xf] %v1115_v21 }
 0x108   : > { %v1129_v24 = vpack.c.bf16 %v798_v23, %v797_v22 }
 0x10a   : > { %1132 = vst [vmem:[%s429_s29 + $0x10] sm:$0xff] %v1129_v24  }
 0x10b PF: > { %s15_s20 = sadd.s32 1, %s1290_s20   ;;  %s1424_s18 = smov %s1286_s19 }
 0x10c   : > { %p12_p5 = scmp.ge.s32.totalorder %s15_s20, 4   ;;  %s1425_s19 = smov %s1427_s21 }
 0x10e   :  { %14 = sbr.rel (!%p12_p5) target bundleno = 2 (0x2), region = 84 }

// kernel: _forward.3
= control target key start
LH: loop header
LB: loop body
LE: loop exit
PB: predicated region body
PF: predicated region fallthrough
CT: control target
= control target key end

     0   :  { %s2346_s18 = smov 0   ;;  %s2348_s19 = smov 0   ;;  %s2729_s0 = inlined_call_operand.vmem [shape: bf16[2,40,384], index: 0, kind: input, shape index: {}, may-alias: {0,2}]   ;;  %s2730_s1 = inlined_call_operand.vmem [shape: bf16[2,40,384], index: 1, kind: input, shape index: {}]   ;;  %s2731_s2 = inlined_call_operand.vmem [shape: bf16[2,40,384], index: 2, kind: input, shape index: {}, may-alias: {0,2}]   ;;  %s2732_s3 = inlined_call_operand.vmem [shape: bf16[3,384,128], index: 3, kind: input, shape index: {}]   ;;  %s2733_s4 = inlined_call_operand.vmem [shape: f32[1,128], index: 4, kind: input, shape index: {}]   ;;  %s2734_s5 = inlined_call_operand.vmem [shape: bf16[2,32,128], index: 5, kind: output, shape index: {}]  }
   0x1   :  { %s2350_s20 = smov 0  }
   0x2 LB: > { %s34_s21 = sadd.s32 1, %s2308_s19  ;;  %p1717_p0 = scmp.ge.s32.totalorder %s2312_s20, 1  ;;  %s2312_s20 = sphi %s2350_s20, %s15_s20   ;;  %s2308_s19 = sphi %s2348_s19, %s2736_s19   ;;  %s2304_s18 = sphi %s2346_s18, %s2735_s18  }
   0x3   : > { %p36_p1 = scmp.ge.s32.totalorder %s34_s21, 2  ;;  %p297_p2 = scmp.lt.s32.totalorder %s2312_s20, 3 }
   0x5   : > { %s2738_s21 = smov (%p36_p1, %s34_s21), 0  ;;  %p298_p3 = pnand %p1717_p0, %p297_p2 }
   0x6   : > { %v2195_v0 = vld [vmem:[%s2732_s3 + $0x40] sm:$0xff] (!%p298_p3)   ;;  %p381_p4 = scmp.lt.s32.totalorder (!%p298_p3), %s2304_s18, 1  ;;  %v2198_v3 = vld [vmem:[%s2732_s3 + $0x48] sm:$0xff] (!%p298_p3)   ;;  %v2201_v6 = vld [vmem:[%s2732_s3 + $0x50] sm:$0xff] (!%p298_p3)   ;;  %vm2315_vm0 = vmmov (!%p298_p3), 0  }
   0x7   : > { %301 = sbr.rel (%p298_p3) target bundleno = 358 (0x166), region = 40  ;;  %v2196_v1 = vld [vmem:[%s2732_s3 + $0x80] sm:$0xff] (!%p298_p3)   ;;  %1929 = vmatprep.subr.bf16.mxu0 (!%p298_p3), %v2195_v0  ;;  %v2199_v4 = vld [vmem:[%s2732_s3 + $0x88] sm:$0xff] (!%p298_p3)   ;;  %v2202_v7 = vld [vmem:[%s2732_s3 + $0x90] sm:$0xff] (!%p298_p3)  }
   0x8   : > { %v2197_v2 = vld [vmem:[%s2732_s3] sm:$0xff] (!%p298_p3)   ;;  %2074 = vmatprep.subr.bf16.mxu1 (!%p298_p3), %v2196_v1  ;;  %v2200_v5 = vld [vmem:[%s2732_s3 + $0x8] sm:$0xff] (!%p298_p3)   ;;  %v2203_v8 = vld [vmem:[%s2732_s3 + $0x10] sm:$0xff] (!%p298_p3)  }
   0x9   : > { %1930 = vmatpush3.bf16.msra.mxu0 (!%p298_p3), %v2197_v2  ;;  %2075 = vmatpush3.bf16.msra.mxu1 (!%p298_p3), %v2196_v1  ;;  %v2204_v9 = vld [vmem:[%s2732_s3 + $0x58] sm:$0xff] (!%p298_p3)   ;;  %v2207_v12 = vld [vmem:[%s2732_s3 + $0x60] sm:$0xff] (!%p298_p3)   ;;  %v2210_v15 = vld [vmem:[%s2732_s3 + $0x68] sm:$0xff] (!%p298_p3)  }
   0xa   : > { %1931 = vmatprep.subr.bf16.mxu0 (!%p298_p3), %v2198_v3  ;;  %2076 = vmatprep.subr.bf16.mxu1 (!%p298_p3), %v2199_v4  ;;  %v2205_v10 = vld [vmem:[%s2732_s3 + $0x98] sm:$0xff] (!%p298_p3)   ;;  %v2208_v13 = vld [vmem:[%s2732_s3 + $0xa0] sm:$0xff] (!%p298_p3)   ;;  %v2211_v16 = vld [vmem:[%s2732_s3 + $0xa8] sm:$0xff] (!%p298_p3)  }
   0xb   : > { %v2206_v11 = vld [vmem:[%s2732_s3 + $0x18] sm:$0xff] (!%p298_p3)   ;;  %v2209_v14 = vld [vmem:[%s2732_s3 + $0x20] sm:$0xff] (!%p298_p3)   ;;  %v2212_v17 = vld [vmem:[%s2732_s3 + $0x28] sm:$0xff] (!%p298_p3)  }
   0xc   : > { %v2213_v18 = vld [vmem:[%s2732_s3 + $0x70] sm:$0xff] (!%p298_p3)   ;;  %v2216_v21 = vld [vmem:[%s2732_s3 + $0x78] sm:$0xff] (!%p298_p3)   ;;  %v2224_v31 = vld [vmem:[%s2732_s3 + $0x100] sm:$0xff] (!%p298_p3)  }
   0xd   : > { %1932 = vmatpush3.bf16.msra.mxu0 (!%p298_p3), %v2200_v5  ;;  %2077 = vmatpush3.bf16.msra.mxu1 (!%p298_p3), %v2199_v4  ;;  %v2214_v19 = vld [vmem:[%s2732_s3 + $0xb0] sm:$0xff] (!%p298_p3)   ;;  %v2217_v24 = vld [vmem:[%s2732_s3 + $0xb8] sm:$0xff] (!%p298_p3)   ;;  %v2225_v33 = vld [vmem:[%s2732_s3 + $0x140] sm:$0xff] (!%p298_p3)  }
   0xe   : > { %s2740_s18 = smov (!%p381_p4, %s2304_s18), 1  ;;  %1933 = vmatprep.subr.bf16.mxu0 %v2201_v6  ;;  %2078 = vmatprep.subr.bf16.mxu1 %v2202_v7  ;;  %v2215_v20 = vld [vmem:[%s2732_s3 + $0x30] sm:$0xff]   ;;  %v2218_v28 = vld [vmem:[%s2732_s3 + $0x38] sm:$0xff]   ;;  %v2228_v36 = vld [vmem:[%s2732_s3 + $0xc0] sm:$0xff]  }
   0xf   : > { %s2418_s10 = smul.u32 60, %s2740_s18  ;;  %v2229_v37 = vld [vmem:[%s2732_s3 + $0x108] sm:$0xff]   ;;  %v2232_v40 = vld [vmem:[%s2732_s3 + $0x110] sm:$0xff]   ;;  %v2235_v44 = vld [vmem:[%s2732_s3 + $0x118] sm:$0xff]  }
  0x10   : > { %v2230_v38 = vld [vmem:[%s2732_s3 + $0x148] sm:$0xff]   ;;  %v2233_v41 = vld [vmem:[%s2732_s3 + $0x150] sm:$0xff]   ;;  %v2236_v45 = vld [vmem:[%s2732_s3 + $0x158] sm:$0xff]  }
  0x11   : > { %1934 = vmatpush3.bf16.msra.mxu0 %v2203_v8  ;;  %2079 = vmatpush3.bf16.msra.mxu1 %v2202_v7  ;;  %s2433_s23 = scalar_lea.vmem %s2729_s0, %s2418_s10  ;;  %v2231_v39 = vld [vmem:[%s2732_s3 + $0xc8] sm:$0xff]   ;;  %v2234_v43 = vld [vmem:[%s2732_s3 + $0xd0] sm:$0xff]   ;;  %v2237_v46 = vld [vmem:[%s2732_s3 + $0xd8] sm:$0xff]   ;;  %s2528_s27 = scalar_lea.vmem %s2730_s1, %s2418_s10 }
  0x12   : > { %1935 = vmatprep.subr.bf16.mxu0 %v2204_v9  ;;  %2080 = vmatprep.subr.bf16.mxu1 %v2205_v10  ;;  %v451_v22 = vld [vmem:[%s2433_s23] sm:$0xff]  ;;  %v2443_v23 = vld [vmem:[%s2433_s23 + $0xc] sm:$0xff]  ;;  %v452_v26 = vld [vmem:[%s2433_s23 + $0x8] sm:$0xf]  ;;  %s1919_s29 = sadd.s32 48, %s2418_s10 }
  0x13   : > { %v1725_v25 = vcombine.high %v451_v22, %v2443_v23  ;;  %v2451_v27 = vld [vmem:[%s2433_s23 + $0x14] sm:$0xf]  ;;  %v2457_v29 = vld [vmem:[%s2433_s23 + $0x20] sm:$0xf]  ;;  %v2464_v32 = vld [vmem:[%s2433_s23 + $0x2c] sm:$0xf]  ;;  %v1724_v34 = vcombine.low %v451_v22, %v2443_v23  ;;  %s2652_s11 = scalar_lea.vmem %s2731_s2, %s1919_s29 }
  0x14   : > { %v1726_v30 = vcombine.low %v452_v26, %v2451_v27  ;;  %v1729_v35 = vcombine.low %v2457_v29, %v2464_v32  ;;  %v2491_v42 = vld [vmem:[%s2433_s23 + $0x18] sm:$0xff]  ;;  %v2506_v47 = vld [vmem:[%s2433_s23 + $0x24] sm:$0xff]  ;;  %v2246_v56 = vld [vmem:[%s2732_s3 + $0x130] sm:$0xff]   ;;  %v1882_v7 = vcombine.low %v2451_v27, %v2457_v29 }
  0x15   : > { %1936 = vmatpush3.bf16.msra.mxu0 %v2206_v11  ;;  %2081 = vmatpush3.bf16.msra.mxu1 %v2205_v10  ;;  %v2238_v48 = vld [vmem:[%s2732_s3 + $0x120] sm:$0xff]   ;;  %v1728_v49 = vcombine.high %v2491_v42, %v2506_v47  ;;  %v1727_v50 = vcombine.low %v2491_v42, %v2506_v47  ;;  %v2241_v53 = vld [vmem:[%s2732_s3 + $0x128] sm:$0xff]   ;;  %v2247_v59 = vld [vmem:[%s2732_s3 + $0x170] sm:$0xff]  }
  0x16   : > { %1937 = vmatprep.subr.bf16.mxu0 %v2207_v12  ;;  %2082 = vmatprep.subr.bf16.mxu1 %v2208_v13  ;;  %v2239_v51 = vld [vmem:[%s2732_s3 + $0x160] sm:$0xff]   ;;  %v2242_v54 = vld [vmem:[%s2732_s3 + $0x168] sm:$0xff]   ;;  %v2248_v60 = vld [vmem:[%s2732_s3 + $0xf0] sm:$0xff]  }
  0x17   : > { %722 = vmatprep.mubr.bf16.mxu0 %v1725_v25  ;;  %2090 = vmatprep.mubr.bf16.mxu1 %v1726_v30  ;;  %v2240_v52 = vld [vmem:[%s2732_s3 + $0xe0] sm:$0xff]   ;;  %v2244_v55 = vld [vmem:[%s2732_s3 + $0xe8] sm:$0xff]   ;;  %v2249_v61 = vld [vmem:[%s2732_s3 + $0x138] sm:$0xff]  }
  0x18   : > { %v2254_v57 = vld [vmem:[%s2528_s27 + $0x4] ss:$12 sps:$4 sm:$0xff]   ;;  %v2255_v58 = vld [vmem:[%s2528_s27 + $0x8] ss:$12 sps:$4 sm:$0xff]   ;;  %v2250_v62 = vld [vmem:[%s2732_s3 + $0x178] sm:$0xff]  }
  0x19   : > { %1938 = vmatpush3.bf16.msra.mxu0 %v2209_v14  ;;  %2083 = vmatpush3.bf16.msra.mxu1 %v2208_v13  ;;  %v2251_v63 = vld [vmem:[%s2732_s3 + $0xf8] sm:$0xff]   ;;  %v2559_v0 = vld [vmem:[%s2732_s3 + $0x1c0] sm:$0xff]   ;;  %v2576_v5 = vld [vmem:[%s2732_s3 + $0x1c8] sm:$0xff]  }
  0x1a   : > { %1939 = vmatprep.subr.bf16.mxu0 %v2210_v15  ;;  %2084 = vmatprep.subr.bf16.mxu1 %v2211_v16  ;;  %v2252_v1 = vld [vmem:[%s2528_s27] ss:$12 sps:$4 sm:$0xff]   ;;  %v2263_v8 = vld [vmem:[%s2528_s27 + $0x1c] ss:$12 sps:$4 sm:$0xff]   ;;  %v2598_v10 = vld [vmem:[%s2732_s3 + $0x1d0] sm:$0xff]  }
  0x1b   : > { %v2565_v2 = vld [vmem:[%s2732_s3 + $0x200] sm:$0xff]   ;;  %v2583_v6 = vld [vmem:[%s2732_s3 + $0x208] sm:$0xff]   ;;  %v2605_v11 = vld [vmem:[%s2732_s3 + $0x210] sm:$0xff]  }
  0x1c   : > { %v2256_v3 = vld [vmem:[%s2528_s27 + $0x20] ss:$12 sps:$4 sm:$0xff]   ;;  %v2265_v12 = vld [vmem:[%s2528_s27 + $0x18] ss:$12 sps:$4 sm:$0xff]   ;;  %v2611_v13 = vld [vmem:[%s2732_s3 + $0x190] sm:$0xff]  }
  0x1d   : > { %1940 = vmatpush3.bf16.msra.mxu0 %v2212_v17  ;;  %2085 = vmatpush3.bf16.msra.mxu1 %v2211_v16  ;;  %v2571_v4 = vld [vmem:[%s2732_s3 + $0x180] sm:$0xff]   ;;  %v2591_v9 = vld [vmem:[%s2732_s3 + $0x188] sm:$0xff]   ;;  %v2618_v14 = vld [vmem:[%s2732_s3 + $0x1d8] sm:$0xff]   ;;  %v1881_v16 = vcombine.high %v2443_v23, %v2491_v42 }
  0x1e   : > { %1941 = vmatprep.subr.bf16.mxu0 %v2213_v18  ;;  %2086 = vmatprep.subr.bf16.mxu1 %v2214_v19  ;;  %v2625_v15 = vld [vmem:[%s2732_s3 + $0x218] sm:$0xff]   ;;  %v2640_v18 = vld [vmem:[%s2732_s3 + $0x1e0] sm:$0xff]   ;;  %v2276_v22 = vld [vmem:[%s2732_s3 + $0x228] sm:$0xff]  }
  0x1f   : > { %v2632_v17 = vld [vmem:[%s2732_s3 + $0x198] sm:$0xff]   ;;  %v2278_v25 = vld [vmem:[%s2732_s3 + $0x1f0] sm:$0xff]  }
  0x20   : > { %v2279_v26 = vld [vmem:[%s2732_s3 + $0x230] sm:$0xff]   ;;  %v2282_v29 = vld [vmem:[%s2732_s3 + $0x238] sm:$0xff]  }
  0x21   : > { %1942 = vmatpush3.bf16.msra.mxu0 %v2215_v20  ;;  %2087 = vmatpush3.bf16.msra.mxu1 %v2214_v19  ;;  %v2647_v19 = vld [vmem:[%s2732_s3 + $0x220] sm:$0xff]   ;;  %v2280_v27 = vld [vmem:[%s2732_s3 + $0x1b0] sm:$0xff]   ;;  %v2283_v30 = vld [vmem:[%s2732_s3 + $0x1b8] sm:$0xff]  }
  0x22   : > { %1943 = vmatprep.subr.bf16.mxu0 %v2216_v21  ;;  %2088 = vmatprep.subr.bf16.mxu1 %v2217_v24  ;;  %v2274_v20 = vld [vmem:[%s2732_s3 + $0x1a0] sm:$0xff]   ;;  %v2275_v21 = vld [vmem:[%s2732_s3 + $0x1e8] sm:$0xff]  }
  0x25   : > { %1944 = vmatpush3.bf16.msra.mxu0 %v2218_v28  ;;  %2089 = vmatpush3.bf16.msra.mxu1 %v2217_v24  ;;  %v2277_v24 = vld [vmem:[%s2732_s3 + $0x1a8] sm:$0xff]   ;;  %v2281_v28 = vld [vmem:[%s2732_s3 + $0x1f8] sm:$0xff]  }
  0x26   : > { %1967 = vmatprep.subr.bf16.mxu0 %v2224_v31  ;;  %2094 = vmatprep.subr.bf16.mxu1 %v2225_v33  ;;  %v1880_v31 = vcombine.low %v2443_v23, %v2491_v42  ;;  %v1883_v23 = vcombine.low %v2506_v47, %v2506_v47 }
  0x28   : > { %723 = vmatmul.mubr.bf16.vlgmr.msra.gmra.mrb[0].mxu0 %v1724_v34  ;;  %2091 = vmatmul.mubr.bf16.vlgmr.msra.gmra.mrb[0].mxu1 %v1729_v35  ;;  %v2314_v34 = vmov 0.0   ;;  %v1884_v35 = vcombine.high %v2506_v47, %v2506_v47 }
  0x29   : > { %1968 = vmatpush3.bf16.msra.mxu0 %v2228_v36  ;;  %2095 = vmatpush3.bf16.msra.mxu1 %v2225_v33  ;;  %v1885_v33 = vcombine.low %v2464_v32, %v2464_v32  ;;  %v1443_v32 = vld [vmem:[%s2652_s11] sm:$0xff] }
  0x2a   : > { %1969 = vmatprep.subr.bf16.mxu0 %v2229_v37  ;;  %2096 = vmatprep.subr.bf16.mxu1 %v2230_v38  ;;  %v1914_v36 = vcombine.high %v1443_v32, %v1443_v32  ;;  %v1913_v37 = vcombine.low %v1443_v32, %v1443_v32 }
  0x2b   : > { %730 = vmatprep.mubr.bf16.mxu0 %v1728_v49  ;;  %2110 = vmatprep.mubr.bf16.mxu1 %v2255_v58 }
  0x2d   : > { %1970 = vmatpush3.bf16.msra.mxu0 %v2231_v39  ;;  %2097 = vmatpush3.bf16.msra.mxu1 %v2230_v38  ;;  %v2289_v38 = vld [vmem:[%s2652_s11 + $0x8] ss:$0 sps:$4 sm:$0xff]   ;;  %s1920_s11 = sshll.u32 %s2740_s18, 4 }
  0x2e   : > { %1971 = vmatprep.subr.bf16.mxu0 %v2232_v40  ;;  %2098 = vmatprep.subr.bf16.mxu1 %v2233_v41  ;;  %s448_s16 = scalar_lea.vmem %s2734_s5, %s1920_s11 }
  0x30   : > { %731 = vmatmul.mubr.bf16.gmra.mrb[4].mxu0 %v1727_v50 }
  0x31   : > { %1972 = vmatpush3.bf16.msra.mxu0 %v2234_v43  ;;  %2099 = vmatpush3.bf16.msra.mxu1 %v2233_v41 }
  0x32   : > { %1973 = vmatprep.subr.bf16.mxu0 %v2235_v44  ;;  %2100 = vmatprep.subr.bf16.mxu1 %v2236_v45 }
  0x33   : > { %1053 = vmatprep.mubr.bf16.mxu0 %v2254_v57 }
  0x35   : > { %1974 = vmatpush3.bf16.msra.mxu0 %v2237_v46  ;;  %2101 = vmatpush3.bf16.msra.mxu1 %v2236_v45 }
  0x36   : > { %1975 = vmatprep.subr.bf16.mxu0 %v2238_v48  ;;  %2102 = vmatprep.subr.bf16.mxu1 %v2239_v51 }
  0x39   : > { %1976 = vmatpush3.bf16.msra.mxu0 %v2240_v52  ;;  %2103 = vmatpush3.bf16.msra.mxu1 %v2239_v51  ;;  %v1723_v51 = vld [vmem:[%s2733_s4] ss:$0 sm:$0xff] }
  0x3a   : > { %1977 = vmatprep.subr.bf16.mxu0 %v2241_v53  ;;  %2104 = vmatprep.subr.bf16.mxu1 %v2242_v54 }
  0x3d   : > { %1978 = vmatpush3.bf16.msra.mxu0 %v2244_v55  ;;  %2105 = vmatpush3.bf16.msra.mxu1 %v2242_v54 }
  0x3e   : > { %1979 = vmatprep.subr.bf16.mxu0 %v2246_v56  ;;  %2106 = vmatprep.subr.bf16.mxu1 %v2247_v59 }
  0x41   : > { %1980 = vmatpush3.bf16.msra.mxu0 %v2248_v60  ;;  %2107 = vmatpush3.bf16.msra.mxu1 %v2247_v59 }
  0x42   : > { %1981 = vmatprep.subr.bf16.mxu0 %v2249_v61  ;;  %2108 = vmatprep.subr.bf16.mxu1 %v2250_v62 }
  0x45   : > { %1982 = vmatpush3.bf16.msra.mxu0 %v2251_v63  ;;  %2109 = vmatpush3.bf16.msra.mxu1 %v2250_v62 }
  0x46   : > { %2005 = vmatprep.subr.bf16.mxu0 %v2559_v0  ;;  %2114 = vmatprep.subr.bf16.mxu1 %v2565_v2 }
  0x48   : > { %1054 = vmatmul.mubr.bf16.vlgmr.msra.gmra.mrb[8].mxu0 %v2252_v1  ;;  %2111 = vmatmul.mubr.bf16.vlgmr.msra.gmra.mrb[0].mxu1 %v2256_v3 }
  0x49   : > { %2006 = vmatpush3.bf16.msra.mxu0 %v2571_v4  ;;  %2115 = vmatpush3.bf16.msra.mxu1 %v2565_v2 }
  0x4a   : > { %2007 = vmatprep.subr.bf16.mxu0 %v2576_v5  ;;  %2116 = vmatprep.subr.bf16.mxu1 %v2583_v6 }
  0x4b   : > { %1061 = vmatprep.mubr.bf16.mxu0 %v2263_v8  ;;  %2130 = vmatprep.mubr.bf16.mxu1 %v1882_v7 }
  0x4d   : > { %2008 = vmatpush3.bf16.msra.mxu0 %v2591_v9  ;;  %2117 = vmatpush3.bf16.msra.mxu1 %v2583_v6 }
  0x4e   : > { %2009 = vmatprep.subr.bf16.mxu0 %v2598_v10  ;;  %2118 = vmatprep.subr.bf16.mxu1 %v2605_v11 }
  0x50   : > { %1062 = vmatmul.mubr.bf16.gmra.mrb[12].mxu0 %v2265_v12 }
  0x51   : > { %2010 = vmatpush3.bf16.msra.mxu0 %v2611_v13  ;;  %2119 = vmatpush3.bf16.msra.mxu1 %v2605_v11 }
  0x52   : > { %2011 = vmatprep.subr.bf16.mxu0 %v2618_v14  ;;  %2120 = vmatprep.subr.bf16.mxu1 %v2625_v15 }
  0x53   : > { %1360 = vmatprep.mubr.bf16.mxu0 %v1881_v16 }
  0x55   : > { %2012 = vmatpush3.bf16.msra.mxu0 %v2632_v17  ;;  %2121 = vmatpush3.bf16.msra.mxu1 %v2625_v15 }
  0x56   : > { %2013 = vmatprep.subr.bf16.mxu0 %v2640_v18  ;;  %2122 = vmatprep.subr.bf16.mxu1 %v2647_v19 }
  0x59   : > { %2014 = vmatpush3.bf16.msra.mxu0 %v2274_v20  ;;  %2123 = vmatpush3.bf16.msra.mxu1 %v2647_v19 }
  0x5a   : > { %2015 = vmatprep.subr.bf16.mxu0 %v2275_v21  ;;  %2124 = vmatprep.subr.bf16.mxu1 %v2276_v22 }
  0x5d   : > { %2016 = vmatpush3.bf16.msra.mxu0 %v2277_v24  ;;  %2125 = vmatpush3.bf16.msra.mxu1 %v2276_v22 }
  0x5e   : > { %2017 = vmatprep.subr.bf16.mxu0 %v2278_v25  ;;  %2126 = vmatprep.subr.bf16.mxu1 %v2279_v26 }
  0x61   : > { %2018 = vmatpush3.bf16.msra.mxu0 %v2280_v27  ;;  %2127 = vmatpush3.bf16.msra.mxu1 %v2279_v26 }
  0x62   : > { %2019 = vmatprep.subr.bf16.mxu0 %v2281_v28  ;;  %2128 = vmatprep.subr.bf16.mxu1 %v2282_v29 }
  0x65   : > { %2020 = vmatpush3.bf16.msra.mxu0 %v2283_v30  ;;  %2129 = vmatpush3.bf16.msra.mxu1 %v2282_v29 }
  0x66   : > { %2043 = vmatprep.subr.bf16.mxu0 %v2559_v0  ;;  %2134 = vmatprep.subr.bf16.mxu1 %v2314_v34 }
  0x68   : > { %1361 = vmatmul.mubr.bf16.vlgmr.msra.gmra.mrb[16].mxu0 %v1880_v31  ;;  %2131 = vmatmul.mubr.bf16.vlgmr.msra.gmra.mrb[4].mxu1 %v1885_v33 }
  0x69   : > { %2044 = vmatpush3.bf16.msra.mxu0 %v2571_v4  ;;  %2135 = vmatpush3.bf16.msra.mxu1 %v2565_v2 }
  0x6a   : > { %2045 = vmatprep.subr.bf16.mxu0 %v2576_v5  ;;  %2136 = vmatprep.subr.bf16.mxu1 %v2314_v34 }
  0x6b   : > { %1368 = vmatprep.mubr.bf16.mxu0 %v1884_v35  ;;  %2150 = vmatprep.mubr.msk.bf16.mxu1 %vm2315_vm0, %v2314_v34 }
  0x6d   : > { %2046 = vmatpush3.bf16.msra.mxu0 %v2591_v9  ;;  %2137 = vmatpush3.bf16.msra.mxu1 %v2583_v6 }
  0x6e   : > { %2047 = vmatprep.subr.bf16.mxu0 %v2598_v10  ;;  %2138 = vmatprep.subr.bf16.mxu1 %v2314_v34 }
  0x70   : > { %1369 = vmatmul.mubr.bf16.gmra.mrb[20].mxu0 %v1883_v23 }
  0x71   : > { %2048 = vmatpush3.bf16.msra.mxu0 %v2611_v13  ;;  %2139 = vmatpush3.bf16.msra.mxu1 %v2605_v11 }
  0x72   : > { %2049 = vmatprep.subr.bf16.mxu0 %v2618_v14  ;;  %2140 = vmatprep.subr.bf16.mxu1 %v2314_v34 }
  0x73   : > { %1488 = vmatprep.mubr.bf16.mxu0 %v1914_v36 }
  0x75   : > { %2050 = vmatpush3.bf16.msra.mxu0 %v2632_v17  ;;  %2141 = vmatpush3.bf16.msra.mxu1 %v2625_v15 }
  0x76   : > { %2051 = vmatprep.subr.bf16.mxu0 %v2640_v18  ;;  %2142 = vmatprep.subr.bf16.mxu1 %v2314_v34 }
  0x79   : > { %2052 = vmatpush3.bf16.msra.mxu0 %v2274_v20  ;;  %2143 = vmatpush3.bf16.msra.mxu1 %v2647_v19 }
  0x7a   : > { %2053 = vmatprep.subr.bf16.mxu0 %v2275_v21  ;;  %2144 = vmatprep.subr.bf16.mxu1 %v2314_v34 }
  0x7d   : > { %2054 = vmatpush3.bf16.msra.mxu0 %v2277_v24  ;;  %2145 = vmatpush3.bf16.msra.mxu1 %v2276_v22 }
  0x7e   : > { %2055 = vmatprep.subr.bf16.mxu0 %v2278_v25  ;;  %2146 = vmatprep.subr.bf16.mxu1 %v2314_v34 }
  0x81   : > { %2056 = vmatpush3.bf16.msra.mxu0 %v2280_v27  ;;  %2147 = vmatpush3.bf16.msra.mxu1 %v2279_v26 }
  0x82   : > { %2057 = vmatprep.subr.bf16.mxu0 %v2281_v28  ;;  %2148 = vmatprep.subr.bf16.mxu1 %v2314_v34 }
  0x85   : > { %2058 = vmatpush3.bf16.msra.mxu0 %v2283_v30  ;;  %2149 = vmatpush3.bf16.msra.mxu1 %v2282_v29 }
  0x88   : > { %1489 = vmatmul.mubr.bf16.vlgmr.msra.gmra.mrb[24].mxu0 %v1913_v37  ;;  %2151 = vmatmul.mubr.bf16.vlgmr.msra.gmra.mrb[8].mxu1 %v2289_v38 }
  0xfb   : > { %v1945_v39 = vpop.f32.mrb[0].mxu0 }
  0xfc   : > { %v1946_v40 = vpop.f32.mrb[1].mxu0 }
  0xfd   : > { %v1947_v41 = vadd.f32 %v1946_v40, %v1945_v39  ;;  %v1948_v42 = vpop.f32.mrb[2].mxu0 }
  0xfe   : > { %v1949_v43 = vpop.f32.mrb[3].mxu0 }
  0xff   : > { %v1950_v44 = vadd.f32 %v1949_v43, %v1948_v42  ;;  %v725_v56 = vadd.f32 %v1947_v41, %v1723_v51 }
 0x101   : > { %v728_v62 = vadd.f32 %v1950_v44, %v1723_v51 }
 0x103   : > { %v1951_v45 = vpop.f32.mrb[4].mxu0 }
 0x104   : > { %v1952_v46 = vpop.f32.mrb[5].mxu0 }
 0x105   : > { %v1953_v47 = vadd.f32 %v1952_v46, %v1951_v45  ;;  %v1954_v48 = vpop.f32.mrb[6].mxu0 }
 0x106   : > { %v1955_v49 = vpop.f32.mrb[7].mxu0 }
 0x107   : > { %v1956_v50 = vadd.f32 %v1955_v49, %v1954_v48  ;;  %v733_v6 = vadd.f32 %v1953_v47, %v1723_v51 }
 0x109   : > { %v736_v10 = vadd.f32 %v1956_v50, %v1723_v51 }
 0x11b   : > { %v1983_v52 = vpop.f32.mrb[8].mxu0  ;;  %v2112_v53 = vpop.f32.mrb[0].mxu1 }
 0x11c   : > { %v1984_v54 = vpop.f32.mrb[9].mxu0  ;;  %v1104_v55 = vpop.f32.mrb[1].mxu1 }
 0x11d   : > { %v1985_v57 = vadd.f32 %v1984_v54, %v1983_v52  ;;  %v1986_v58 = vpop.f32.mrb[10].mxu0  ;;  %v2113_v59 = vpop.f32.mrb[2].mxu1 }
 0x11e   : > { %v1987_v60 = vpop.f32.mrb[11].mxu0  ;;  %v1107_v61 = vpop.f32.mrb[3].mxu1 }
 0x11f   : > { %v2156_v63 = vadd.f32 %v1985_v57, %v725_v56  ;;  %v1988_v0 = vadd.f32 %v1987_v60, %v1986_v58 }
 0x121   : > { %v2157_v1 = vadd.f32 %v2156_v63, %v1104_v55  ;;  %v2160_v2 = vadd.f32 %v1988_v0, %v728_v62 }
 0x123   : > { %v2161_v3 = vadd.f32 %v2160_v2, %v1107_v61  ;;  %v1989_v4 = vpop.f32.mrb[12].mxu0 }
 0x124   : > { %v1990_v5 = vpop.f32.mrb[13].mxu0 }
 0x125   : > { %v1991_v7 = vadd.f32 %v1990_v5, %v1989_v4  ;;  %v1992_v8 = vpop.f32.mrb[14].mxu0 }
 0x126   : > { %v1993_v9 = vpop.f32.mrb[15].mxu0 }
 0x127   : > { %v2154_v11 = vadd.f32 %v1991_v7, %v733_v6  ;;  %v1994_v12 = vadd.f32 %v1993_v9, %v1992_v8 }
 0x129   : > { %v2155_v13 = vadd.f32 %v2154_v11, %v2112_v53  ;;  %v2158_v14 = vadd.f32 %v1994_v12, %v736_v10 }
 0x12b   : > { %v2159_v15 = vadd.f32 %v2158_v14, %v2113_v59 }
 0x13b   : > { %v2021_v16 = vpop.f32.mrb[16].mxu0  ;;  %v2132_v17 = vpop.f32.mrb[4].mxu1 }
 0x13c   : > { %v2022_v18 = vpop.f32.mrb[17].mxu0  ;;  %v1410_v19 = vpop.f32.mrb[5].mxu1 }
 0x13d   : > { %v2023_v20 = vadd.f32 %v2022_v18, %v2021_v16  ;;  %v2024_v21 = vpop.f32.mrb[18].mxu0  ;;  %v2133_v22 = vpop.f32.mrb[6].mxu1 }
 0x13e   : > { %v2025_v24 = vpop.f32.mrb[19].mxu0  ;;  %v1413_v25 = vpop.f32.mrb[7].mxu1 }
 0x13f   : > { %v1411_v26 = vadd.f32 %v2023_v20, %v1410_v19  ;;  %v2026_v27 = vadd.f32 %v2025_v24, %v2024_v21 }
 0x141   : > { %v1424_v28 = vadd.f32 %v2157_v1, %v1411_v26  ;;  %v1414_v29 = vadd.f32 %v2026_v27, %v1413_v25 }
 0x143   : > { %v1425_v30 = vadd.f32 %v2161_v3, %v1414_v29  ;;  %v2027_v31 = vpop.f32.mrb[20].mxu0 }
 0x144   : > { %v2028_v33 = vpop.f32.mrb[21].mxu0 }
 0x145   : > { %v1927_v34 = vpack.c.bf16 %v1425_v30, %v1424_v28  ;;  %v2029_v35 = vadd.f32 %v2028_v33, %v2027_v31  ;;  %v2030_v23 = vpop.f32.mrb[22].mxu0 }
 0x146   : > { %v2031_v32 = vpop.f32.mrb[23].mxu0 }
 0x147   : > { %1928 = vst [vmem:[%s448_s16] sm:$0xff] %v1927_v34   ;;  %v1419_v36 = vadd.f32 %v2132_v17, %v2029_v35 }
 0x149   : > { %v1426_v37 = vadd.f32 %v2155_v13, %v1419_v36 }
 0x14b   : > { %v1923_v38 = vpack.c.bf16 %v1426_v37, %v1426_v37 }
 0x14d   : > { %1442 = vst [vmem:[%s448_s16 + $0x8] sm:$0xf] %v1923_v38 }
 0x15b   : > { %v2059_v39 = vpop.f32.mrb[24].mxu0  ;;  %v1530_v40 = vpop.f32.mrb[8].mxu1 }
 0x15c   : > { %v2060_v41 = vpop.f32.mrb[25].mxu0  ;;  %v2152_v42 = vpop.f32.mrb[9].mxu1 }
 0x15d   : > { %v2061_v43 = vadd.f32 %v2060_v41, %v2059_v39  ;;  %v2062_v44 = vpop.f32.mrb[26].mxu0  ;;  %v1533_v45 = vpop.f32.mrb[10].mxu1 }
 0x15e   : > { %v2063_v46 = vpop.f32.mrb[27].mxu0  ;;  %v2153_v47 = vpop.f32.mrb[11].mxu1 }
 0x15f   : > { %v1531_v48 = vadd.f32 %v2061_v43, %v1530_v40 }
 0x161   : > { %v1536_v49 = vadd.f32 %v2159_v15, %v1531_v48 }
 0x163   : > { %v1537_v50 = vpack.c.bf16 %v1536_v49, %v1536_v49 }
 0x165   : > { %1538 = vst [vmem:[%s448_s16 + $0xc] sm:$0xf] %v1537_v50 }
 0x166 PF: > { %s15_s20 = sadd.s32 1, %s2312_s20   ;;  %s2735_s18 = smov %s2308_s19 }
 0x167   : > { %p12_p5 = scmp.ge.s32.totalorder %s15_s20, 4   ;;  %s2736_s19 = smov %s2738_s21 }
 0x169   :  { %14 = sbr.rel (!%p12_p5) target bundleno = 2 (0x2), region = 84 }

</bundles_post_ra>
